<compile_context>
chip_gen: v7x
topology: tpu7x:2x2x1
jax: 0.10.0
libtpu: 0.0.40
codegen_flags: <defaults>
</compile_context>

<pallas_src>
import functools

import jax
import jax.numpy as jnp
from jax.experimental import pallas as pl
from jax.experimental.pallas import tpu as pltpu


def _round_up(n, m):
    return ((n + m - 1) // m) * m


def _fm2_kernel(x_ref, sel_ref, fm2_ref):
    """Second-order FM term for one batch tile.

    x_ref   : (TM, F*E)  streamed, flattened embedding tile (native dtype)
    sel_ref : (F*E, E)   constant 0/1 selector, sel[f*E+e, e] = 1 (resident)
    fm2_ref : (TM, 1)    output: sum_e[(sum_f x)^2 - sum_f x^2]
    """
    x = x_ref[...]
    xf = x.astype(jnp.float32)

    # s[b, e] = sum_f x[b, f, e]  ==  x_flat @ selector   (MXU, f32 accumulate)
    s = jnp.dot(x, sel_ref[...], preferred_element_type=jnp.float32)   # (TM, E)
    add_square = jnp.sum(s * s, axis=1, keepdims=True)                 # (TM, 1)
    square_add = jnp.sum(xf * xf, axis=1, keepdims=True)               # (TM, 1)
    fm2_ref[...] = add_square - square_add


def fm_forward(feature_seq_embedding, features, w1_weight, w1_bias,
               *, block_b=1024):
    """FM forward. Returns the same (B, B) array the PyTorch module returns."""
    B, F, E = feature_seq_embedding.shape
    assert features.shape == (B, F)

    # Stream x in its native dtype: reshape is free, no extra HBM pass.
    x = feature_seq_embedding.reshape(B, F * E)
    x_dtype = x.dtype

    # Constant 0/1 selector implementing the sum over the feature axis.
    sel = (jnp.arange(F * E, dtype=jnp.int32)[:, None] % E
           == jnp.arange(E, dtype=jnp.int32)[None, :]).astype(x_dtype)

    # Batch tile: multiple of the sublane packing for the streamed dtype,
    # large (amortize ~0.35us/step overhead), capped at 4096 (v5e scoped-VMEM
    # default), and shrunk so the grid has >= ~4 steps (v7x megacore sharding).
    sub = 8 * max(1, 4 // jnp.dtype(x_dtype).itemsize)    # f32 -> 8, bf16 -> 16
    tm = min(max(block_b, sub), 4096)
    tm = min(tm, _round_up(pl.cdiv(B, 4), sub))
    tm = _round_up(max(tm, sub), sub)
    grid = (pl.cdiv(B, tm),)     # ragged last block handled by Pallas masking

    fm2 = pl.pallas_call(
        _fm2_kernel,
        out_shape=jax.ShapeDtypeStruct((B, 1), jnp.float32),
        grid=grid,
        in_specs=[
            pl.BlockSpec((tm, F * E), lambda i: (i, 0)),   # streamed embeddings
            pl.BlockSpec((F * E, E), lambda i: (0, 0)),    # resident selector
        ],
        out_specs=pl.BlockSpec((tm, 1), lambda i: (i, 0)),
        compiler_params=pltpu.CompilerParams(
            dimension_semantics=("parallel",)),
    )(x, sel)

    fm_2_order = fm2[:, 0]                                             # (B,)

    # First-order linear term: tiny matvec, XLA fuses it with the final add.
    w = jnp.asarray(w1_weight, jnp.float32).reshape(F, 1)
    b = jnp.asarray(w1_bias, jnp.float32).reshape(1, 1)
    fm_1_order = features.astype(jnp.float32) @ w + b                  # (B, 1)

    # Faithful to PyTorch: torch.add((B,), (B, 1)) broadcasts to (B, B),
    # result[i, j] = fm_2_order[j] + fm_1_order[i, 0].
    return fm_1_order + fm_2_order[None, :]


def fm_reference(feature_seq_embedding, features, w1_weight, w1_bias):
    """Pure-JAX (dot-free, exact f32) mirror of the PyTorch FM.forward."""
    x = feature_seq_embedding.astype(jnp.float32)
    add_square = jnp.square(jnp.sum(x, axis=1))               # (B, E)
    square_add = jnp.sum(jnp.square(x), axis=1)               # (B, E)
    fm_2_order = jnp.sum(add_square - square_add, axis=1)     # (B,)
    fm_1_order = (jnp.sum(features * w1_weight.reshape(1, -1), axis=1,
                          keepdims=True)
                  + w1_bias.reshape(1, 1))                    # (B, 1)
    return fm_1_order + fm_2_order[None, :]                   # (B, B), as torch


if __name__ == "__main__":
    feature_len = 10
    embedding_size = 32
    batch = 37   # not a tile multiple -> exercises the ragged last block

    key = jax.random.PRNGKey(0)
    kx, kf, kw, kb = jax.random.split(key, 4)
    feature_seq_embedding = jax.random.normal(
        kx, (batch, feature_len, embedding_size), jnp.float32)
    features = jax.random.normal(kf, (batch, feature_len), jnp.float32)

    bound = 1.0 / (feature_len ** 0.5)
    w1_weight = jax.random.uniform(kw, (1, feature_len), jnp.float32, -bound, bound)
    w1_bias = jax.random.uniform(kb, (1,), jnp.float32, -bound, bound)

    fwd = jax.jit(functools.partial(fm_forward, block_b=1024))

    out = jax.block_until_ready(
        fwd(feature_seq_embedding, features, w1_weight, w1_bias))
    ref = fm_reference(feature_seq_embedding, features, w1_weight, w1_bias)

    assert out.shape == (batch, batch), out.shape
    assert jnp.allclose(out, ref, rtol=1e-3, atol=1e-2), (
        float(jnp.max(jnp.abs(out - ref))))

    print("KERNEL_OK")
</pallas_src>

<mosaic_0001>
module attributes {stable_mosaic.version = 11 : i64} {
  func.func @_fm2_kernel(%arg0: i32, %arg1: memref<16x320xf32, #tpu.memory_space<vmem>>, %arg2: memref<320x32xf32, #tpu.memory_space<vmem>>, %arg3: memref<16x1xf32, #tpu.memory_space<vmem>>) attributes {dimension_semantics = [#tpu.dimension_semantics<parallel>], iteration_bounds = array<i64: 3>, scalar_prefetch = 0 : i64, scratch_operands = 0 : i64, tpu.core_type = #tpu.core_type<tc>, window_params = [{transform_indices = @transform_0, window_bounds = array<i64: 16, 320>}, {pipeline_mode = #tpu.pipeline_mode<synchronous>, transform_indices = @transform_1, window_bounds = array<i64: 320, 32>}, {transform_indices = @transform_2, window_bounds = array<i64: 16, 1>}]} {
    %c0 = arith.constant 0 : index
    %c0_0 = arith.constant 0 : index
    %0 = vector.load %arg1[%c0, %c0_0] : memref<16x320xf32, #tpu.memory_space<vmem>>, vector<16x320xf32>
    %c0_1 = arith.constant 0 : index
    %c0_2 = arith.constant 0 : index
    %1 = vector.load %arg2[%c0_1, %c0_2] : memref<320x32xf32, #tpu.memory_space<vmem>>, vector<320x32xf32>
    %cst = arith.constant dense<0.000000e+00> : vector<16x32xf32>
    %2 = tpu.matmul %0, %1, %cst {dimension_numbers = #tpu.dot_dimension_numbers<[1], [0], [0], [1], [0, 0, 1, 1], [], []>} : vector<16x320xf32>, vector<320x32xf32>, vector<16x32xf32> -> vector<16x32xf32>
    %3 = arith.mulf %2, %2 : vector<16x32xf32>
    %cst_3 = arith.constant dense<0.000000e+00> : vector<16xf32>
    %4 = vector.multi_reduction <add>, %3, %cst_3 [1] : vector<16x32xf32> to vector<16xf32>
    %5 = vector.shape_cast %4 : vector<16xf32> to vector<16x1xf32>
    %6 = arith.mulf %0, %0 : vector<16x320xf32>
    %cst_4 = arith.constant dense<0.000000e+00> : vector<16xf32>
    %7 = vector.multi_reduction <add>, %6, %cst_4 [1] : vector<16x320xf32> to vector<16xf32>
    %8 = vector.shape_cast %7 : vector<16xf32> to vector<16x1xf32>
    %9 = arith.subf %5, %8 : vector<16x1xf32>
    %c0_5 = arith.constant 0 : index
    %c0_6 = arith.constant 0 : index
    %10 = vector.load %arg3[%c0_5, %c0_6] : memref<16x1xf32, #tpu.memory_space<vmem>>, vector<16x1xf32>
    tpu.vector_store %arg3[%c0_5, %c0_6], %9 {strides = array<i32>} : memref<16x1xf32, #tpu.memory_space<vmem>>, vector<16x1xf32>,
    return
  }
  func.func @transform_0(%arg0: i32) -> (i32, i32) {
    %c0_i32 = arith.constant 0 : i32
    %c0_i32_0 = arith.constant 0 : i32
    return %arg0, %c0_i32 : i32, i32
  }
  func.func @transform_1(%arg0: i32) -> (i32, i32) {
    %c0_i32 = arith.constant 0 : i32
    %c0_i32_0 = arith.constant 0 : i32
    %c0_i32_1 = arith.constant 0 : i32
    return %c0_i32, %c0_i32_0 : i32, i32
  }
  func.func @transform_2(%arg0: i32) -> (i32, i32) {
    %c0_i32 = arith.constant 0 : i32
    %c0_i32_0 = arith.constant 0 : i32
    return %arg0, %c0_i32 : i32, i32
  }
}

</mosaic_0001>

<bundles_post_ra>
// kernel: fm_forward.1
= control target key start
LH: loop header
LB: loop body
LE: loop exit
PB: predicated region body
PF: predicated region fallthrough
CT: control target
= control target key end

     0   :  { %s961_s9 = smov 0   ;;  %s963_s10 = smov 0   ;;  %s1176_s0 = inlined_call_operand.vmem [shape: f32[37,320], index: 0, kind: input, shape index: {}]   ;;  %s1177_s1 = inlined_call_operand.vmem [shape: f32[320,32], index: 1, kind: input, shape index: {}]   ;;  %s1178_s2 = inlined_call_operand.vmem [shape: f32[37,1], index: 2, kind: output, shape index: {}]  }
   0x1   :  { %s965_s11 = smov 0  }
   0x2 LB: > { %s974_s12 = sadd.s32 4294967295, %s912_s11   ;;  %s976_s13 = sadd.s32 1, %s912_s11   ;;  %s912_s11 = sphi %s965_s11, %s1182_s11   ;;  %s908_s10 = sphi %s963_s10, %s1181_s10   ;;  %s904_s9 = sphi %s961_s9, %s1180_s9  }
   0x3   : > { %s63_s14 = ssub.s32 %s912_s11, %s976_s13  ;;  %s66_s15 = sadd.s32 1, %s908_s10 }
   0x4   : > { %p64_p0 = scmp.eq.s32.totalorder %s63_s14, 0  ;;  %p76_p1 = scmp.ne.s32.totalorder %s908_s10, %s904_s9 }
   0x5   : > { %p77_p2 = scmp.eq.s32.totalorder %s974_s12, 2  ;;  %p628_p3 = scmp.ge.s32.totalorder %s912_s11, 1 }
   0x6   : > { %s984_s16 = scalar_select %p64_p0, %s908_s10, %s66_s15  }
   0x7   : > { %p986_p4 = por %p77_p2, %p76_p1  ;;  %p124_p5 = scmp.lt.s32.totalorder %s912_s11, 4 }
   0x9   : > { %p125_p6 = pnand %p628_p3, %p124_p5 }
   0xa   : > { %v195_v0 = vld [vmem:[%s1177_s1 + $0x80] sm:$0xff] (!%p125_p6)  ;;  %v196_v1 = vld [vmem:[%s1177_s1 + $0x88] sm:$0xff] (!%p125_p6)  ;;  %s1000_s24 = sshll.u32 (!%p125_p6), %s974_s12, 1  ;;  %v197_v5 = vld [vmem:[%s1177_s1 + $0x90] sm:$0xff] (!%p125_p6)  ;;  %vm219_vm0 = vcmask (!%p125_p6), 523264   ;;  %vm378_vm1 = vcmask (!%p125_p6), 261120  }
   0xb   : > { %128 = sbr.rel (%p125_p6) target bundleno = 463 (0x1cf), region = 28  ;;  %v179_v2 = vld [vmem:[%s1177_s1] sm:$0xff] (!%p125_p6)  ;;  %v721_v3 = vpack.c.bf16 (!%p125_p6), %v196_v1, %v195_v0  ;;  %v180_v4 = vld [vmem:[%s1177_s1 + $0x8] sm:$0xff] (!%p125_p6)  ;;  %v198_v6 = vld [vmem:[%s1177_s1 + $0x98] sm:$0xff] (!%p125_p6)  ;;  %p157_p7 = scmp.lt.s32.totalorder (!%p125_p6), %s1000_s24, 4  ;;  %vm403_vm2 = vcmask (!%p125_p6), 7168  }
   0xc   : > { %v723_v7 = vpack.c.bf16 (!%p125_p6), %v180_v4, %v179_v2  ;;  %v725_v8 = vpack.c.bf16 (!%p125_p6), %v198_v6, %v197_v5  ;;  %v181_v9 = vld [vmem:[%s1177_s1 + $0x10] sm:$0xff] (!%p125_p6)  ;;  %v182_v10 = vld [vmem:[%s1177_s1 + $0x18] sm:$0xff] (!%p125_p6)  ;;  %v199_v11 = vld [vmem:[%s1177_s1 + $0xa0] sm:$0xff] (!%p125_p6) }
   0xd   : > { %722 = vmatprep.subr.bf16.mxu0 (!%p125_p6), %v721_v3  ;;  %v200_v12 = vld [vmem:[%s1177_s1 + $0xa8] sm:$0xff] (!%p125_p6)  ;;  %v727_v13 = vpack.c.bf16 (!%p125_p6), %v182_v10, %v181_v9  ;;  %v183_v15 = vld [vmem:[%s1177_s1 + $0x20] sm:$0xff] (!%p125_p6)  ;;  %v201_v17 = vld [vmem:[%s1177_s1 + $0xb0] sm:$0xff] (!%p125_p6) }
   0xe   : > { %724 = vmatpush3.bf16.msra.mxu0 (!%p125_p6), %v723_v7  ;;  %v729_v14 = vpack.c.bf16 (!%p125_p6), %v200_v12, %v199_v11  ;;  %v184_v16 = vld [vmem:[%s1177_s1 + $0x28] sm:$0xff] (!%p125_p6)  ;;  %v202_v18 = vld [vmem:[%s1177_s1 + $0xb8] sm:$0xff] (!%p125_p6)  ;;  %v211_v19 = vld [vmem:[%s1177_s1 + $0x100] sm:$0xff] (!%p125_p6) }
   0xf   : > { %726 = vmatprep.subr.bf16.mxu0 (!%p125_p6), %v725_v8  ;;  %v212_v20 = vld [vmem:[%s1177_s1 + $0x108] sm:$0xff] (!%p125_p6)  ;;  %v731_v21 = vpack.c.bf16 (!%p125_p6), %v184_v16, %v183_v15  ;;  %v213_v23 = vld [vmem:[%s1177_s1 + $0x110] sm:$0xff] (!%p125_p6)  ;;  %v733_v24 = vpack.c.bf16 (!%p125_p6), %v202_v18, %v201_v17  ;;  %v186_v26 = vld [vmem:[%s1177_s1 + $0x38] sm:$0xff] (!%p125_p6) }
  0x10   : > { %v753_v22 = vpack.c.bf16 (!%p125_p6), %v212_v20, %v211_v19  ;;  %v185_v25 = vld [vmem:[%s1177_s1 + $0x30] sm:$0xff] (!%p125_p6)  ;;  %v214_v27 = vld [vmem:[%s1177_s1 + $0x118] sm:$0xff] (!%p125_p6)  ;;  %v203_v28 = vld [vmem:[%s1177_s1 + $0xc0] sm:$0xff] (!%p125_p6) }
  0x11   : > { %v204_v29 = vld [vmem:[%s1177_s1 + $0xc8] sm:$0xff] (!%p125_p6)  ;;  %v757_v30 = vpack.c.bf16 (!%p125_p6), %v214_v27, %v213_v23  ;;  %v215_v31 = vld [vmem:[%s1177_s1 + $0x120] sm:$0xff] (!%p125_p6)  ;;  %v735_v33 = vpack.c.bf16 (!%p125_p6), %v186_v26, %v185_v25  ;;  %v217_v38 = vld [vmem:[%s1177_s1 + $0x130] sm:$0xff] (!%p125_p6) }
  0x12   : > { %s158_s15 = scalar_select %p157_p7, %s1000_s24, 4  ;;  %728 = vmatpush3.bf16.msra.mxu0 %v727_v13  ;;  %754 = vmatprep.subr.bf16.mxu1 %v753_v22  ;;  %v216_v32 = vld [vmem:[%s1177_s1 + $0x128] sm:$0xff]  ;;  %v187_v34 = vld [vmem:[%s1177_s1 + $0x40] sm:$0xff]  ;;  %v737_v37 = vpack.c.bf16 %v204_v29, %v203_v28  ;;  %v218_v39 = vld [vmem:[%s1177_s1 + $0x138] sm:$0xff] }
  0x13   : > { %730 = vmatprep.subr.bf16.mxu0 %v729_v14  ;;  %756 = vmatpush3.bf16.msra.mxu1 %v753_v22  ;;  %v188_v35 = vld [vmem:[%s1177_s1 + $0x48] sm:$0xff]  ;;  %v761_v36 = vpack.c.bf16 %v216_v32, %v215_v31  ;;  %v205_v41 = vld [vmem:[%s1177_s1 + $0xd0] sm:$0xff]  ;;  %v206_v42 = vld [vmem:[%s1177_s1 + $0xd8] sm:$0xff]  ;;  %v765_v45 = vpack.c.bf16 %v218_v39, %v217_v38  ;;  %s651_s22 = sshll.u32 (%p986_p4), %s974_s12, 4 }
  0x14   : > { %s769_s29 = smul.u32 24, %s158_s15  ;;  %758 = vmatprep.subr.bf16.mxu1 %v757_v30  ;;  %v739_v44 = vpack.c.bf16 %v188_v35, %v187_v34  ;;  %v741_v46 = vpack.c.bf16 %v206_v42, %v205_v41  ;;  %v189_v47 = vld [vmem:[%s1177_s1 + $0x50] sm:$0xff]  ;;  %v190_v48 = vld [vmem:[%s1177_s1 + $0x58] sm:$0xff]  ;;  %v207_v49 = vld [vmem:[%s1177_s1 + $0xe0] sm:$0xff]  ;;  %s1142_s26 = scalar_lea.vmem (%p986_p4), %s1178_s2, %s651_s22  }
  0x15   : > { %v208_v50 = vld [vmem:[%s1177_s1 + $0xe8] sm:$0xff]  ;;  %v743_v51 = vpack.c.bf16 %v190_v48, %v189_v47  ;;  %v191_v53 = vld [vmem:[%s1177_s1 + $0x60] sm:$0xff]  ;;  %v209_v55 = vld [vmem:[%s1177_s1 + $0xf0] sm:$0xff] }
  0x16   : > { %s1067_s27 = scalar_lea.vmem %s1176_s0, %s769_s29  ;;  %732 = vmatpush3.bf16.msra.mxu0 %v731_v21  ;;  %v745_v52 = vpack.c.bf16 %v208_v50, %v207_v49  ;;  %v192_v54 = vld [vmem:[%s1177_s1 + $0x68] sm:$0xff]  ;;  %v210_v56 = vld [vmem:[%s1177_s1 + $0xf8] sm:$0xff]  ;;  %v193_v60 = vld [vmem:[%s1177_s1 + $0x70] sm:$0xff] }
  0x17   : > { %734 = vmatprep.subr.bf16.mxu0 %v733_v24  ;;  %v174_v40 = vld [vmem:[%s1067_s27 + $0x8] sm:$0xff]  ;;  %v175_v43 = vld [vmem:[%s1067_s27 + $0x10] sm:$0xff]  ;;  %760 = vmatpush3.bf16.msra.mxu1 %v757_v30  ;;  %v747_v58 = vpack.c.bf16 %v192_v54, %v191_v53  ;;  %v749_v59 = vpack.c.bf16 %v210_v56, %v209_v55  ;;  %v194_v61 = vld [vmem:[%s1177_s1 + $0x78] sm:$0xff] }
  0x18   : > { %290 = vmatprep.mubr.f32.mxu0 %v174_v40  ;;  %718 = vmatprep.mubr.msk.f32.mxu1 %vm219_vm0, %v175_v43  ;;  %v178_v57 = vld [vmem:[%s1067_s27 + $0x28] sm:$0xff]  ;;  %v751_v62 = vpack.c.bf16 %v194_v61, %v193_v60  ;;  %v173_v63 = vld [vmem:[%s1067_s27] sm:$0xff]  ;;  %v176_v1 = vld [vmem:[%s1067_s27 + $0x18] sm:$0xff]  ;;  %v386_v2 = vmul.f32 %v174_v40, %v174_v40  ;;  %v387_v4 = vmul.f32 %v175_v43, %v175_v43 }
  0x19   : > { %762 = vmatprep.subr.bf16.mxu1 %v761_v36  ;;  %v177_v0 = vld [vmem:[%s1067_s27 + $0x20] sm:$0xff]  ;;  %v385_v3 = vmul.f32 %v173_v63, %v173_v63  ;;  %v388_v6 = vmul.f32 %v176_v1, %v176_v1  ;;  %v390_v10 = vmul.f32 %v178_v57, %v178_v57  ;;  %s148_s27 = sand.u32 1, %s904_s9   ;;  %s414_s9 = ssub.s32 (%p986_p4), 5, %s1000_s24 }
  0x1a   : > { %736 = vmatpush3.bf16.msra.mxu0 %v735_v33  ;;  %v389_v5 = vmul.f32 %v177_v0, %v177_v0  ;;  %v392_v8 = vsel %vm219_vm0, %v387_v4, 0.0  ;;  %s629_s20 = sshll.u32 %s148_s27, 4  ;;  %p415_p8 = scmp.lt.s32.totalorder (%p986_p4), %s414_s9, 2 }
  0x1b   : > { %738 = vmatprep.subr.bf16.mxu0 %v737_v37  ;;  %764 = vmatpush3.bf16.msra.mxu1 %v761_v36  ;;  %v391_v7 = vadd.f32 %v386_v2, %v385_v3  ;;  %v397_v12 = vsel %vm219_vm0, %v390_v10, 0.0  ;;  %s1131_s21 = scalar_lea.vmem [#allocation2], %s629_s20  }
  0x1c   : > { %766 = vmatprep.subr.bf16.mxu1 %v765_v45  ;;  %v396_v11 = vadd.f32 %v389_v5, %v388_v6 }
  0x1d   : > { %v393_v9 = vadd.f32 %v392_v8, %v391_v7 }
  0x1e   : > { %740 = vmatpush3.bf16.msra.mxu0 %v739_v44  ;;  %v398_v13 = vadd.f32 %v397_v12, %v396_v11 }
  0x1f   : > { %742 = vmatprep.subr.bf16.mxu0 %v741_v46  ;;  %768 = vmatpush3.bf16.msra.mxu1 %v765_v45 }
  0x20   : > { %394 = vadd.xlane.f32.xlu1 %v393_v9 }
  0x22   : > { %744 = vmatpush3.bf16.msra.mxu0 %v743_v51  ;;  %719 = vmatmul.mubr.msk.f32.vlgmr.msra.gmra.mrb[0].mxu1 %vm219_vm0, %v178_v57 }
  0x23   : > { %746 = vmatprep.subr.bf16.mxu0 %v745_v52 }
  0x24   : > { %399 = vadd.xlane.f32.xlu1 %v398_v13 }
  0x26   : > { %748 = vmatpush3.bf16.msra.mxu0 %v747_v58 }
  0x27   : > { %750 = vmatprep.subr.bf16.mxu0 %v749_v59 }
  0x2a   : > { %752 = vmatpush3.bf16.msra.mxu0 %v751_v62 }
  0x2d   : > { %291 = vmatmul.mubr.f32.vlgmr.msra.gmra.mrb[0].mxu0 %v173_v63 }
  0x2e   : > { %295 = vmatprep.mubr.f32.mxu0 %v177_v0 }
  0x31   : > { %296 = vmatmul.mubr.f32.gmra.mrb[2].mxu0 %v176_v1 }
  0xad   : > { %v395_v28 = vpop.xlane.xlu1 %394 }
  0xb1   : > { %v400_v31 = vpop.xlane.xlu1 %399 }
  0xf5   : > { %v720_v14 = vpop.f32.mrb[0].mxu1 }
  0xf6   : > { %v367_v15 = vpop.f32.mrb[1].mxu1 }
 0x100   : > { %v686_v16 = vpop.f32.mrb[0].mxu0 }
 0x101   : > { %v687_v17 = vpop.f32.mrb[1].mxu0 }
 0x102   : > { %v688_v18 = vadd.f32 %v687_v17, %v686_v16 }
 0x104   : > { %v368_v19 = vadd.f32 %v688_v18, %v367_v15  ;;  %v689_v20 = vpop.f32.mrb[2].mxu0 }
 0x105   : > { %v690_v21 = vpop.f32.mrb[3].mxu0 }
 0x106   : > { %v376_v22 = vmul.f32 %v368_v19, %v368_v19  ;;  %v691_v23 = vadd.f32 %v690_v21, %v689_v20 }
 0x108   : > { %v373_v24 = vadd.f32 %v720_v14, %v691_v23  ;;  %v379_v25 = vsel %vm378_vm1, %v376_v22, 0.0 }
 0x109   : > { %380 = vadd.xlane.f32.xlu0 %v379_v25 }
 0x10a   : > { %v377_v26 = vmul.f32 %v373_v24, %v373_v24 }
 0x10c   : > { %v382_v27 = vsel %vm378_vm1, %v377_v26, 0.0 }
 0x10d   : > { %383 = vadd.xlane.f32.xlu0 %v382_v27 }
 0x196   : > { %v381_v29 = vpop.xlane.xlu0 %380 }
 0x197   : > { %v401_v30 = vsub.f32 %v381_v29, %v395_v28  ;;  %412 = sbr.rel (!%p986_p4) target bundleno = 463 (0x1cf), region = 32 }
 0x199   : > { %404 = vst.msk [vmem:[%s1131_s21] sm:$0xff] %vm403_vm2, %v401_v30 }
 0x19a   : > { %v384_v32 = vpop.xlane.xlu0 %383 }
 0x19b   : > { %v402_v33 = vsub.f32 %v384_v32, %v400_v31 }
 0x19d   : > { %405 = vst.msk [vmem:[%s1131_s21 + $0x8] sm:$0xff] %vm403_vm2, %v402_v33 }
 0x19e   : > { %s1184_s9 = smov (!%p415_p8, %s414_s9), 2 }
 0x19f   : > { %s636_s28 = sshll.u32 %s1184_s9, 7 }
 0x1a0   : > { %p639_p9 = scmp.eq.s32.totalorder %s636_s28, 0 }
 0x1a1   : > { %s1148_s30 = sshrl.u32 (!%p639_p9), %s1184_s9, 1 }
 0x1a2   : > { %423 = sbr.rel (%p639_p9) target bundleno = 463 (0x1cf), region = 36  ;;  %p640_p10 = scmp.le.s32.totalorder (!%p639_p9), %s1148_s30, 0 }
 0x1a9   : > { %581 = sbr.rel (%p640_p10) target bundleno = 442 (0x1ba), region = 112  ;;  %s914_s12 = smov (!%p640_p10), %s1142_s26  }
 0x1aa   : > { %s918_s17 = smov (!%p640_p10), %s1131_s21   ;;  %s922_s24 = smov (!%p640_p10), 0  }
 0x1ab   : > { %s926_s3 = smov (!%p640_p10), 0  }
 0x1b0 LB: >> { %v487_v34 = vld [vmem:[%s920_s17] sm:$0xff]  ;;  %v489_v35 = vld [vmem:[%s920_s17 + $0x8] sm:$0xff]  ;;  %s491_s4 = sadd.s32 1, %s924_s24  ;;  %s481_s3 = sadd.s32 1, %s928_s3   ;;  %s928_s3 = sphi %s926_s3, %s481_s3   ;;  %s924_s24 = sphi %s922_s24, %s923_s24   ;;  %s920_s17 = sphi %s918_s17, %s496_s17   ;;  %s916_s12 = sphi %s914_s12, %s497_s12  }
 0x1b1   : >> { %488 = vst [vmem:[%s916_s12] sm:$0xff] %v487_v34  ;;  %490 = vst [vmem:[%s916_s12 + $0x8] sm:$0xff] %v489_v35  ;;  %p492_p11 = scmp.ge.s32.totalorder %s491_s4, %s1148_s30  ;;  %p480_p12 = scmp.ge.s32.totalorder %s481_s3, %s1148_s30 }
 0x1b3   : >> { %s1186_s4 = smov (%p492_p11, %s491_s4), 0  ;;  %483 = sbr.rel (!%p480_p12) target bundleno = 432 (0x1b0), region = 118 }
 0x1b4   : >> { %s641_s5 = sshll.u32 %s1186_s4, 4  ;;  %s923_s24 = smov %s1186_s4  }
 0x1b5   : >> { %s496_s17 = scalar_lea.vmem %s1131_s21, %s641_s5 [#allocation2]   ;;  %s497_s12 = scalar_lea.vmem %s1142_s26, %s641_s5  }
 0x1ba PF: > { %s1158_s6 = sand.u32 1, %s1184_s9   ;;  %s652_s29 = sshll.u32 %s1148_s30, 4 }
 0x1bb   : > { %s502_s7 = scalar_lea.vmem %s1131_s21, %s652_s29 [#allocation2]   ;;  %s504_s8 = scalar_lea.vmem %s1142_s26, %s652_s29  }
 0x1bc   : > { %p646_p13 = scmp.le.s32.totalorder %s1158_s6, 0 }
 0x1bd   : > { %s930_s11 = smov (!%p646_p13), %s504_s8   ;;  %s934_s14 = smov (!%p646_p13), %s502_s7  }
 0x1be   : > { %595 = sbr.rel (%p646_p13) target bundleno = 463 (0x1cf), region = 123  ;;  %s938_s15 = smov (!%p646_p13), 0  }
 0x1bf   : > { %s942_s18 = smov (!%p646_p13), 0  }
 0x1c5 LB: >> { %v514_v36 = vld [vmem:[%s936_s14] sm:$0xff]  ;;  %s516_s19 = sadd.s32 1, %s940_s15  ;;  %s508_s18 = sadd.s32 1, %s944_s18   ;;  %s944_s18 = sphi %s942_s18, %s508_s18   ;;  %s940_s15 = sphi %s938_s15, %s939_s15   ;;  %s936_s14 = sphi %s934_s14, %s521_s14   ;;  %s932_s11 = sphi %s930_s11, %s522_s11  }
 0x1c6   : >> { %515 = vst [vmem:[%s932_s11] sm:$0xff] %v514_v36  ;;  %p517_p0 = scmp.ge.s32.totalorder %s516_s19, %s1158_s6  ;;  %p507_p1 = scmp.ge.s32.totalorder %s508_s18, %s1158_s6 }
 0x1c8   : >> { %s1188_s19 = smov (%p517_p0, %s516_s19), 0  ;;  %510 = sbr.rel (!%p507_p1) target bundleno = 453 (0x1c5), region = 129 }
 0x1c9   : >> { %s647_s27 = sshll.u32 %s1188_s19, 3  ;;  %s939_s15 = smov %s1188_s19  }
 0x1ca   : >> { %s521_s14 = scalar_lea.vmem %s502_s7, %s647_s27 [#allocation2]   ;;  %s522_s11 = scalar_lea.vmem %s504_s8, %s647_s27  }
 0x1cf PF: > { %p9_p2 = scmp.ge.s32.totalorder %s976_s13, 5   ;;  %s1180_s9 = smov %s908_s10 }
 0x1d0   : > { %s1181_s10 = smov %s984_s16  ;;  %s1182_s11 = smov %s976_s13 }
 0x1d1   :  { %11 = sbr.rel (!%p9_p2) target bundleno = 2 (0x2), region = 140 }

</bundles_post_ra>
